<compile_context>
chip_gen: v5e
topology: v5e:2x2
jax: 0.10.0
libtpu: 0.0.40
codegen_flags: <defaults>
</compile_context>

<pallas_src>
import functools

import jax
import jax.numpy as jnp
from jax import lax
from jax.experimental import pallas as pl
from jax.experimental.pallas import tpu as pltpu


def _pick_tile(dim, align, max_tile):
    """Largest divisor of `dim` that is a multiple of `align` and <= max_tile.

    Falls back to the full dimension (block dim == array dim is always legal).
    """
    if dim % align != 0:
        return dim
    best = align
    d = align
    limit = min(dim, max(align, max_tile))
    while d <= limit:
        if dim % d == 0:
            best = d
        d += align
    return best


def _bn_reduce_kernel(x_ref, sum_ref, sq_ref, sum_acc, sq_acc, *, n_groups, group):
    """Accumulate per-channel sum and sum-of-squares over the (N, HW) tiles."""
    n_id = pl.program_id(1)
    l_id = pl.program_id(2)

    @pl.when(jnp.logical_and(n_id == 0, l_id == 0))
    def _():
        sum_acc[...] = jnp.zeros_like(sum_acc)
        sq_acc[...] = jnp.zeros_like(sq_acc)

    c_tile = sum_acc.shape[0]
    psum = jnp.zeros((c_tile, group), jnp.float32)
    psq = jnp.zeros((c_tile, group), jnp.float32)

    if n_groups <= 32:
        # Short trip count: fully unrolled; static 128-aligned lane slices of
        # the loaded tile are vreg-exact (no relayout). Hot loop stays on the
        # 4 VALUs; no per-tile cross-lane (XLU) reduction.
        x = x_ref[...].astype(jnp.float32)            # (c_tile, l_tile)
        for k in range(n_groups):                     # static, unrolled
            chunk = x[:, k * group:(k + 1) * group]
            psum = psum + chunk
            psq = psq + chunk * chunk
    else:
        # Long trip count: bounded code size; 128-aligned dynamic loads
        # straight from the VMEM ref.
        def body(k, carry):
            s, q = carry
            start = pl.multiple_of(k * group, group)
            chunk = x_ref[:, pl.ds(start, group)].astype(jnp.float32)
            return s + chunk, q + chunk * chunk

        psum, psq = lax.fori_loop(0, n_groups, body, (psum, psq), unroll=8)

    sum_acc[...] += psum
    sq_acc[...] += psq

    # Single XLU cross-lane reduce + (C_tile, 1) store only at the last step.
    @pl.when(jnp.logical_and(n_id == pl.num_programs(1) - 1,
                             l_id == pl.num_programs(2) - 1))
    def _():
        sum_ref[...] = jnp.sum(sum_acc[...], axis=1, keepdims=True)
        sq_ref[...] = jnp.sum(sq_acc[...], axis=1, keepdims=True)


def _bn_normalize_kernel(x_ref, scale_ref, shift_ref, y_ref):
    """y = x * scale + shift with per-channel (folded) scale/shift."""
    x = x_ref[...].astype(jnp.float32)                # (C_tile, L_tile)
    y = x * scale_ref[...] + shift_ref[...]           # (C_tile, 1) broadcasts
    y_ref[...] = y.astype(y_ref.dtype)


@functools.partial(jax.jit, static_argnames=("eps", "momentum", "training"))
def batchnorm2d_forward(x, weight, bias, running_mean, running_var, *,
                        eps=1e-5, momentum=0.1, training=True):
    """BatchNorm2d forward. x is NCHW.

    Returns (y_nchw, new_running_mean, new_running_var).
    Training mode: batch statistics (biased variance) for both normalization
    and the running-stat update, exactly as in the reference module.
    """
    N, C, H, W = x.shape
    L = H * W
    total = N * L

    # Free, contiguous view: NCHW -> (N, C, H*W). No HBM transpose round trip.
    x3 = x.reshape(N, C, L)

    itemsize = jnp.dtype(x.dtype).itemsize
    sublane = max(8, 32 // itemsize)                  # 8 for f32, 16 for bf16
    c_tile = _pick_tile(C, sublane, 64)
    # ~2 MiB per x tile: double-buffered x-in + y-out in phase 2 stays well
    # under the v5e 16 MiB scoped-VMEM default (and v6e/v7x limits).
    target_l = max(128, (2 * 1024 * 1024) // max(1, c_tile * itemsize))
    l_tile = _pick_tile(L, 128, target_l)

    group = 128 if l_tile % 128 == 0 else l_tile
    n_groups = l_tile // group

    grid = (C // c_tile, N, L // l_tile)
    # N dim squeezed out of the kernel view -> kernel refs are (C_tile, L_tile).
    x_spec = pl.BlockSpec((None, c_tile, l_tile), lambda c, n, l: (n, c, l))
    ch_spec = pl.BlockSpec((c_tile, 1), lambda c, n, l: (c, 0))

    if training:
        # ---- Phase 1: per-channel sum / sum-of-squares (one pass over x) ----
        sum_c, sq_c = pl.pallas_call(
            functools.partial(_bn_reduce_kernel, n_groups=n_groups, group=group),
            out_shape=(jax.ShapeDtypeStruct((C, 1), jnp.float32),
                       jax.ShapeDtypeStruct((C, 1), jnp.float32)),
            grid_spec=pltpu.PrefetchScalarGridSpec(
                num_scalar_prefetch=0,
                grid=grid,
                in_specs=[x_spec],
                out_specs=(ch_spec, ch_spec),
                scratch_shapes=[pltpu.VMEM((c_tile, group), jnp.float32),
                                pltpu.VMEM((c_tile, group), jnp.float32)],
            ),
            compiler_params=pltpu.CompilerParams(
                dimension_semantics=("parallel", "arbitrary", "arbitrary"),
                vmem_limit_bytes=32 * 1024 * 1024,
            ),
        )(x3)

        # ---- Tiny (C,)-sized glue: stats, affine fold, running-stat update ----
        batch_mean = sum_c.reshape(C) / total
        batch_var = jnp.maximum(sq_c.reshape(C) / total - batch_mean * batch_mean,
                                0.0)                  # clamp E[x^2]-mean^2 cancellation
        new_running_mean = (1.0 - momentum) * running_mean + momentum * batch_mean
        new_running_var = (1.0 - momentum) * running_var + momentum * batch_var
    else:
        batch_mean = running_mean.astype(jnp.float32)
        batch_var = running_var.astype(jnp.float32)
        new_running_mean = running_mean
        new_running_var = running_var

    inv_std = lax.rsqrt(batch_var + eps)
    scale = weight.astype(jnp.float32) * inv_std
    shift = bias.astype(jnp.float32) - batch_mean * scale

    # ---- Phase 2: normalize, y = x * scale + shift (one read + one write) ----
    y3 = pl.pallas_call(
        _bn_normalize_kernel,
        out_shape=jax.ShapeDtypeStruct((N, C, L), x.dtype),
        grid_spec=pltpu.PrefetchScalarGridSpec(
            num_scalar_prefetch=0,
            grid=grid,
            in_specs=[x_spec, ch_spec, ch_spec],
            out_specs=x_spec,
        ),
        compiler_params=pltpu.CompilerParams(
            dimension_semantics=("parallel", "parallel", "parallel"),
            vmem_limit_bytes=32 * 1024 * 1024,
        ),
    )(x3, scale.reshape(C, 1), shift.reshape(C, 1))

    y = y3.reshape(N, C, H, W)
    return y, new_running_mean, new_running_var


if __name__ == "__main__":
    key = jax.random.PRNGKey(0)
    N, C, H, W = 2, 4, 16, 16
    x = jax.random.normal(key, (N, C, H, W), dtype=jnp.float32)

    # deterministic parameter init, matching reset_parameters()
    weight = jnp.ones((C,), jnp.float32)
    bias = jnp.zeros((C,), jnp.float32)
    running_mean = jnp.zeros((C,), jnp.float32)
    running_var = jnp.ones((C,), jnp.float32)

    y, rm, rv = batchnorm2d_forward(x, weight, bias, running_mean, running_var,
                                    eps=1e-5, momentum=0.1, training=True)
    jax.block_until_ready((y, rm, rv))

    # plain-JAX reference (training-mode forward of the PyTorch module)
    bm = x.mean(axis=(0, 2, 3))
    bv = x.var(axis=(0, 2, 3))          # biased, matching unbiased=False
    y_ref = (x - bm[None, :, None, None]) / jnp.sqrt(bv[None, :, None, None] + 1e-5)
    y_ref = y_ref * weight[None, :, None, None] + bias[None, :, None, None]
    assert jnp.allclose(y, y_ref, atol=1e-4, rtol=1e-4), "y mismatch"
    assert jnp.allclose(rm, 0.9 * running_mean + 0.1 * bm, atol=1e-5), "running_mean mismatch"
    assert jnp.allclose(rv, 0.9 * running_var + 0.1 * bv, atol=1e-5), "running_var mismatch"

    print("KERNEL_OK")
</pallas_src>

<mosaic_0001>
module attributes {stable_mosaic.version = 11 : i64} {
  func.func @_bn_reduce_kernel(%arg0: i32, %arg1: i32, %arg2: i32, %arg3: memref<1x4x256xf32, #tpu.memory_space<vmem>>, %arg4: memref<4x1xf32, #tpu.memory_space<vmem>>, %arg5: memref<4x1xf32, #tpu.memory_space<vmem>>, %arg6: memref<4x128xf32, #tpu.memory_space<vmem>>, %arg7: memref<4x128xf32, #tpu.memory_space<vmem>>) attributes {dimension_semantics = [#tpu.dimension_semantics<parallel>, #tpu.dimension_semantics<arbitrary>, #tpu.dimension_semantics<arbitrary>], iteration_bounds = array<i64: 1, 2, 1>, scalar_prefetch = 0 : i64, scratch_operands = 2 : i64, tpu.core_type = #tpu.core_type<tc>, window_params = [{transform_indices = @transform_0, window_bounds = array<i64: 1, 4, 256>}, {transform_indices = @transform_1, window_bounds = array<i64: 4, 1>}, {transform_indices = @transform_2, window_bounds = array<i64: 4, 1>}]} {
    %c0_i32 = arith.constant 0 : i32
    %0 = arith.cmpi eq, %arg1, %c0_i32 : i32
    %c0_i32_0 = arith.constant 0 : i32
    %1 = arith.cmpi eq, %arg2, %c0_i32_0 : i32
    %2 = arith.andi %0, %1 : i1
    %3 = arith.extui %2 : i1 to i32
    %c0_i32_1 = arith.constant 0 : i32
    %4 = arith.cmpi ne, %3, %c0_i32_1 : i32
    scf.if %4 {
      %cst_15 = arith.constant 0.000000e+00 : f32
      %28 = vector.broadcast %cst_15 : f32 to vector<4x128xf32>
      %c0_16 = arith.constant 0 : index
      %c0_17 = arith.constant 0 : index
      %29 = vector.load %arg6[%c0_16, %c0_17] : memref<4x128xf32, #tpu.memory_space<vmem>>, vector<4x128xf32>
      tpu.vector_store %arg6[%c0_16, %c0_17], %28 {strides = array<i32>} : memref<4x128xf32, #tpu.memory_space<vmem>>, vector<4x128xf32>,
      %cst_18 = arith.constant 0.000000e+00 : f32
      %30 = vector.broadcast %cst_18 : f32 to vector<4x128xf32>
      %c0_19 = arith.constant 0 : index
      %c0_20 = arith.constant 0 : index
      %31 = vector.load %arg7[%c0_19, %c0_20] : memref<4x128xf32, #tpu.memory_space<vmem>>, vector<4x128xf32>
      tpu.vector_store %arg7[%c0_19, %c0_20], %30 {strides = array<i32>} : memref<4x128xf32, #tpu.memory_space<vmem>>, vector<4x128xf32>,
    } else {
    }
    %cst = arith.constant 0.000000e+00 : f32
    %5 = vector.broadcast %cst : f32 to vector<4x128xf32>
    %cst_2 = arith.constant 0.000000e+00 : f32
    %6 = vector.broadcast %cst_2 : f32 to vector<4x128xf32>
    %c0 = arith.constant 0 : index
    %c0_3 = arith.constant 0 : index
    %c0_4 = arith.constant 0 : index
    %7 = vector.load %arg3[%c0, %c0_3, %c0_4] : memref<1x4x256xf32, #tpu.memory_space<vmem>>, vector<1x4x256xf32>
    %8 = vector.shape_cast %7 : vector<1x4x256xf32> to vector<4x256xf32>
    %9 = vector.extract_strided_slice %8 {offsets = [0, 0], sizes = [4, 128], strides = [1, 1]} : vector<4x256xf32> to vector<4x128xf32>
    %10 = arith.addf %5, %9 : vector<4x128xf32>
    %11 = arith.mulf %9, %9 : vector<4x128xf32>
    %12 = arith.addf %6, %11 : vector<4x128xf32>
    %13 = vector.extract_strided_slice %8 {offsets = [0, 128], sizes = [4, 128], strides = [1, 1]} : vector<4x256xf32> to vector<4x128xf32>
    %14 = arith.addf %10, %13 : vector<4x128xf32>
    %15 = arith.mulf %13, %13 : vector<4x128xf32>
    %16 = arith.addf %12, %15 : vector<4x128xf32>
    %c0_5 = arith.constant 0 : index
    %c0_6 = arith.constant 0 : index
    %17 = vector.load %arg6[%c0_5, %c0_6] : memref<4x128xf32, #tpu.memory_space<vmem>>, vector<4x128xf32>
    %18 = arith.addf %17, %14 : vector<4x128xf32>
    %c0_7 = arith.constant 0 : index
    %c0_8 = arith.constant 0 : index
    %19 = vector.load %arg6[%c0_7, %c0_8] : memref<4x128xf32, #tpu.memory_space<vmem>>, vector<4x128xf32>
    tpu.vector_store %arg6[%c0_7, %c0_8], %18 {strides = array<i32>} : memref<4x128xf32, #tpu.memory_space<vmem>>, vector<4x128xf32>,
    %c0_9 = arith.constant 0 : index
    %c0_10 = arith.constant 0 : index
    %20 = vector.load %arg7[%c0_9, %c0_10] : memref<4x128xf32, #tpu.memory_space<vmem>>, vector<4x128xf32>
    %21 = arith.addf %20, %16 : vector<4x128xf32>
    %c0_11 = arith.constant 0 : index
    %c0_12 = arith.constant 0 : index
    %22 = vector.load %arg7[%c0_11, %c0_12] : memref<4x128xf32, #tpu.memory_space<vmem>>, vector<4x128xf32>
    tpu.vector_store %arg7[%c0_11, %c0_12], %21 {strides = array<i32>} : memref<4x128xf32, #tpu.memory_space<vmem>>, vector<4x128xf32>,
    %c1_i32 = arith.constant 1 : i32
    %23 = arith.cmpi eq, %arg1, %c1_i32 : i32
    %c0_i32_13 = arith.constant 0 : i32
    %24 = arith.cmpi eq, %arg2, %c0_i32_13 : i32
    %25 = arith.andi %23, %24 : i1
    %26 = arith.extui %25 : i1 to i32
    %c0_i32_14 = arith.constant 0 : i32
    %27 = arith.cmpi ne, %26, %c0_i32_14 : i32
    scf.if %27 {
      %c0_15 = arith.constant 0 : index
      %c0_16 = arith.constant 0 : index
      %28 = vector.load %arg6[%c0_15, %c0_16] : memref<4x128xf32, #tpu.memory_space<vmem>>, vector<4x128xf32>
      %cst_17 = arith.constant dense<0.000000e+00> : vector<4xf32>
      %29 = vector.multi_reduction <add>, %28, %cst_17 [1] : vector<4x128xf32> to vector<4xf32>
      %30 = vector.shape_cast %29 : vector<4xf32> to vector<4x1xf32>
      %c0_18 = arith.constant 0 : index
      %c0_19 = arith.constant 0 : index
      %31 = vector.load %arg4[%c0_18, %c0_19] : memref<4x1xf32, #tpu.memory_space<vmem>>, vector<4x1xf32>
      tpu.vector_store %arg4[%c0_18, %c0_19], %30 {strides = array<i32>} : memref<4x1xf32, #tpu.memory_space<vmem>>, vector<4x1xf32>,
      %c0_20 = arith.constant 0 : index
      %c0_21 = arith.constant 0 : index
      %32 = vector.load %arg7[%c0_20, %c0_21] : memref<4x128xf32, #tpu.memory_space<vmem>>, vector<4x128xf32>
      %cst_22 = arith.constant dense<0.000000e+00> : vector<4xf32>
      %33 = vector.multi_reduction <add>, %32, %cst_22 [1] : vector<4x128xf32> to vector<4xf32>
      %34 = vector.shape_cast %33 : vector<4xf32> to vector<4x1xf32>
      %c0_23 = arith.constant 0 : index
      %c0_24 = arith.constant 0 : index
      %35 = vector.load %arg5[%c0_23, %c0_24] : memref<4x1xf32, #tpu.memory_space<vmem>>, vector<4x1xf32>
      tpu.vector_store %arg5[%c0_23, %c0_24], %34 {strides = array<i32>} : memref<4x1xf32, #tpu.memory_space<vmem>>, vector<4x1xf32>,
    } else {
    }
    return
  }
  func.func @transform_0(%arg0: i32, %arg1: i32, %arg2: i32) -> (i32, i32, i32) {
    %c0_i32 = arith.constant 0 : i32
    return %arg1, %arg0, %arg2 : i32, i32, i32
  }
  func.func @transform_1(%arg0: i32, %arg1: i32, %arg2: i32) -> (i32, i32) {
    %c0_i32 = arith.constant 0 : i32
    %c0_i32_0 = arith.constant 0 : i32
    return %arg0, %c0_i32 : i32, i32
  }
  func.func @transform_2(%arg0: i32, %arg1: i32, %arg2: i32) -> (i32, i32) {
    %c0_i32 = arith.constant 0 : i32
    %c0_i32_0 = arith.constant 0 : i32
    return %arg0, %c0_i32 : i32, i32
  }
}

module attributes {stable_mosaic.version = 11 : i64} {
  func.func @_bn_normalize_kernel(%arg0: i32, %arg1: i32, %arg2: i32, %arg3: memref<1x4x256xf32, #tpu.memory_space<vmem>>, %arg4: memref<4x1xf32, #tpu.memory_space<vmem>>, %arg5: memref<4x1xf32, #tpu.memory_space<vmem>>, %arg6: memref<1x4x256xf32, #tpu.memory_space<vmem>>) attributes {dimension_semantics = [#tpu.dimension_semantics<parallel>, #tpu.dimension_semantics<parallel>, #tpu.dimension_semantics<parallel>], iteration_bounds = array<i64: 1, 2, 1>, scalar_prefetch = 0 : i64, scratch_operands = 0 : i64, tpu.core_type = #tpu.core_type<tc>, window_params = [{transform_indices = @transform_0, window_bounds = array<i64: 1, 4, 256>}, {transform_indices = @transform_1, window_bounds = array<i64: 4, 1>}, {transform_indices = @transform_2, window_bounds = array<i64: 4, 1>}, {transform_indices = @transform_3, window_bounds = array<i64: 1, 4, 256>}]} {
    %c0 = arith.constant 0 : index
    %c0_0 = arith.constant 0 : index
    %c0_1 = arith.constant 0 : index
    %0 = vector.load %arg3[%c0, %c0_0, %c0_1] : memref<1x4x256xf32, #tpu.memory_space<vmem>>, vector<1x4x256xf32>
    %1 = vector.shape_cast %0 : vector<1x4x256xf32> to vector<4x256xf32>
    %c0_2 = arith.constant 0 : index
    %c0_3 = arith.constant 0 : index
    %2 = vector.load %arg4[%c0_2, %c0_3] : memref<4x1xf32, #tpu.memory_space<vmem>>, vector<4x1xf32>
    %3 = vector.broadcast %2 : vector<4x1xf32> to vector<4x256xf32>
    %4 = arith.mulf %1, %3 : vector<4x256xf32>
    %c0_4 = arith.constant 0 : index
    %c0_5 = arith.constant 0 : index
    %5 = vector.load %arg5[%c0_4, %c0_5] : memref<4x1xf32, #tpu.memory_space<vmem>>, vector<4x1xf32>
    %6 = vector.broadcast %5 : vector<4x1xf32> to vector<4x256xf32>
    %7 = arith.addf %4, %6 : vector<4x256xf32>
    %c0_6 = arith.constant 0 : index
    %c0_7 = arith.constant 0 : index
    %c0_8 = arith.constant 0 : index
    %8 = vector.load %arg6[%c0_6, %c0_7, %c0_8] : memref<1x4x256xf32, #tpu.memory_space<vmem>>, vector<1x4x256xf32>
    %9 = vector.shape_cast %8 : vector<1x4x256xf32> to vector<4x256xf32>
    %10 = vector.shape_cast %7 : vector<4x256xf32> to vector<1x4x256xf32>
    tpu.vector_store %arg6[%c0_6, %c0_7, %c0_8], %10 {strides = array<i32>} : memref<1x4x256xf32, #tpu.memory_space<vmem>>, vector<1x4x256xf32>,
    return
  }
  func.func @transform_0(%arg0: i32, %arg1: i32, %arg2: i32) -> (i32, i32, i32) {
    %c0_i32 = arith.constant 0 : i32
    return %arg1, %arg0, %arg2 : i32, i32, i32
  }
  func.func @transform_1(%arg0: i32, %arg1: i32, %arg2: i32) -> (i32, i32) {
    %c0_i32 = arith.constant 0 : i32
    %c0_i32_0 = arith.constant 0 : i32
    return %arg0, %c0_i32 : i32, i32
  }
  func.func @transform_2(%arg0: i32, %arg1: i32, %arg2: i32) -> (i32, i32) {
    %c0_i32 = arith.constant 0 : i32
    %c0_i32_0 = arith.constant 0 : i32
    return %arg0, %c0_i32 : i32, i32
  }
  func.func @transform_3(%arg0: i32, %arg1: i32, %arg2: i32) -> (i32, i32, i32) {
    %c0_i32 = arith.constant 0 : i32
    return %arg1, %arg0, %arg2 : i32, i32, i32
  }
}

</mosaic_0001>

<bundles_post_ra>
// kernel: batchnorm2d_forward.3
= control target key start
LH: loop header
LB: loop body
LE: loop exit
PB: predicated region body
PF: predicated region fallthrough
CT: control target
= control target key end

     0   :  { %s529_s12 = smov 0   ;;  %s531_s13 = smov 0   ;;  %s565_s0 = inlined_call_operand.vmem [shape: f32[2,4,256], index: 0, kind: input, shape index: {}]   ;;  %s566_s1 = inlined_call_operand.vmem [shape: f32[4,1], index: 1, kind: input, shape index: {}]   ;;  %s567_s2 = inlined_call_operand.vmem [shape: f32[4,1], index: 2, kind: input, shape index: {}]   ;;  %s568_s3 = inlined_call_operand.vmem [shape: f32[2,4,256], index: 3, kind: output, shape index: {}]  }
   0x1   :  { %s533_s14 = smov 0  }
   0x2 LB: > { %s28_s15 = sadd.s32 1, %s501_s13  ;;  %p447_p0 = scmp.ge.s32.totalorder %s505_s14, 1  ;;  %s505_s14 = sphi %s533_s14, %s13_s14   ;;  %s501_s13 = sphi %s531_s13, %s570_s13   ;;  %s497_s12 = sphi %s529_s12, %s569_s12  }
   0x3   : > { %p30_p1 = scmp.ge.s32.totalorder %s28_s15, 2  ;;  %p191_p2 = scmp.lt.s32.totalorder %s505_s14, 3 }
   0x5   : > { %s572_s15 = smov (%p30_p1, %s28_s15), 0  ;;  %p192_p3 = pnand %p447_p0, %p191_p2 }
   0x6   : > { %p240_p4 = scmp.lt.s32.totalorder (!%p192_p3), %s497_s12, 1 }
   0x7   : > { %195 = sbr.rel (%p192_p3) target bundleno = 142 (0x8e), region = 32 }
   0xc   : > { %v276_v0 = vld [vmem:[%s566_s1] sm:$0xf]  ;;  %v507_v1 = vmov 0   ;;  %s574_s12 = smov (!%p240_p4, %s497_s12), 1  ;;  %v508_v3 = vmov 839922192  }
   0xd   : > { %482 = vset.pattern.permute.xlu0 %v507_v1  ;;  %v287_v2 = vld [vmem:[%s567_s2] sm:$0xf]  ;;  %v282_v4 = vunpack.c.l.s4 %v508_v3  ;;  %s454_s20 = sshll.u32 %s574_s12, 3 }
   0xe   : > { %279 = vperm.xlu0 %482, %v276_v0   ;;  %s251_s23 = scalar_lea.vmem %s565_s0, %s454_s20  ;;  %s273_s26 = scalar_lea.vmem %s568_s3, %s454_s20 }
   0xf   : > { %v283_v6 = vunpack.c.0.s8 %v282_v4  ;;  %v275_v8 = vld [vmem:[%s251_s23] sm:$0xff] }
  0x16   : > { %290 = vperm.xlu0 %482, %v287_v2  }
  0x80   : > { %v280_v5 = vpop.permute.xlu0 %279 }
  0x81   : > { %v284_v7 = vperm.slane %v280_v5, %v283_v6 }
  0x83   : > { %v286_v10 = vmul.f32 %v284_v7, %v275_v8 }
  0x88   : > { %v291_v9 = vpop.permute.xlu0 %290 }
  0x89   : > { %v295_v11 = vperm.slane %v291_v9, %v283_v6 }
  0x8b   : > { %v297_v12 = vadd.f32 %v295_v11, %v286_v10 }
  0x8d   : > { %298 = vst [vmem:[%s273_s26] sm:$0xff] %v297_v12 }
  0x8e PF: > { %s13_s14 = sadd.s32 1, %s505_s14   ;;  %s569_s12 = smov %s501_s13 }
  0x8f   : > { %p10_p5 = scmp.ge.s32.totalorder %s13_s14, 4   ;;  %s570_s13 = smov %s572_s15 }
  0x91   :  { %12 = sbr.rel (!%p10_p5) target bundleno = 2 (0x2), region = 68 }

// kernel: batchnorm2d_forward.2
= control target key start
LH: loop header
LB: loop body
LE: loop exit
PB: predicated region body
PF: predicated region fallthrough
CT: control target
= control target key end

     0   :  { %s425_s9 = smov 0   ;;  %s427_s10 = smov 0   ;;  %s467_s0 = inlined_call_operand.vmem [shape: f32[2,4,256], index: 0, kind: input, shape index: {}]   ;;  %s468_s1 = inlined_call_operand.vmem [shape: f32[4,1], index: 1, kind: output, shape index: {0}]   ;;  %s469_s2 = inlined_call_operand.vmem [shape: f32[4,1], index: 2, kind: output, shape index: {1}]  }
   0x1   :  { %s429_s11 = smov 0  }
   0x2 LB: > { %s28_s12 = sadd.s32 1, %s403_s10  ;;  %p348_p0 = scmp.ge.s32.totalorder %s407_s11, 1  ;;  %s407_s11 = sphi %s429_s11, %s13_s11   ;;  %s403_s10 = sphi %s427_s10, %s471_s10   ;;  %s399_s9 = sphi %s425_s9, %s470_s9  }
   0x3   : > { %p30_p1 = scmp.ge.s32.totalorder %s28_s12, 2  ;;  %p147_p2 = scmp.lt.s32.totalorder %s407_s11, 3 }
   0x5   : > { %s473_s12 = smov (%p30_p1, %s28_s12), 0  ;;  %p148_p3 = pnand %p348_p0, %p147_p2 }
   0x6   : > { %p181_p4 = scmp.lt.s32.totalorder (!%p148_p3), %s399_s9, 1  ;;  %p202_p5 = scmp.eq.s32.totalorder (!%p148_p3), %s399_s9, 0 }
   0x7   : > { %151 = sbr.rel (%p148_p3) target bundleno = 159 (0x9f), region = 24 }
   0xc   : > { %s182_s13 = scalar_select %p181_p4, %s399_s9, 1  ;;  %v409_v0 = vmov (%p202_p5), 0.0  }
   0xd   : > { %207 = sbr.rel (!%p202_p5) target bundleno = 18 (0x12), region = 28  ;;  %208 = vst [vmem:[#allocation2] sm:$0xf] (%p202_p5), %v409_v0 }
   0xe   : > { %s357_s14 = sshll.u32 %s182_s13, 3  ;;  %209 = vst [vmem:[#allocation3] sm:$0xf] (%p202_p5), %v409_v0 }
   0xf   : > { %s192_s17 = scalar_lea.vmem %s467_s0, %s357_s14 }
  0x12 PF: > { %v210_v1 = vld [vmem:[%s192_s17] sm:$0xff]  ;;  %p226_p6 = scmp.eq.s32.totalorder %s399_s9, 1 }
  0x13   : > { %v215_v2 = vrot.slane %v210_v1, 4  ;;  %v212_v3 = vmul.f32 %v210_v1, %v210_v1  ;;  %vm232_vm0 = vcmask (%p226_p6), 1043456   ;;  %vm236_vm1 = vcmask (%p226_p6), 3072  }
  0x14   : > { %v220_v4 = vld [vmem:[#allocation2] sm:$0xf] }
  0x15   : > { %v217_v5 = vadd.f32 %v215_v2, %v210_v1  ;;  %v218_v6 = vmul.f32 %v215_v2, %v215_v2  ;;  %v223_v7 = vld [vmem:[#allocation3] sm:$0xf] }
  0x17   : > { %v221_v8 = vadd.f32 %v220_v4, %v217_v5  ;;  %v219_v9 = vadd.f32 %v218_v6, %v212_v3  ;;  %230 = sbr.rel (!%p226_p6) target bundleno = 159 (0x9f), region = 32 }
  0x19   : > { %222 = vst [vmem:[#allocation2] sm:$0xf] %v221_v8  ;;  %v224_v10 = vadd.f32 %v223_v7, %v219_v9 }
  0x1b   : > { %225 = vst [vmem:[#allocation3] sm:$0xf] %v224_v10 }
  0x20   : > { %v231_v11 = vld [vmem:[#allocation2] sm:$0xf] }
  0x21   : > { %v233_v12 = vsel %vm232_vm0, %v231_v11, 0.0 }
  0x22   : > { %234 = vadd.xlane.f32.xlu0 %v233_v12  ;;  %v238_v13 = vld [vmem:[#allocation3] sm:$0xf] }
  0x23   : > { %v239_v14 = vsel %vm232_vm0, %v238_v13, 0.0 }
  0x2a   : > { %240 = vadd.xlane.f32.xlu0 %v239_v14 }
  0x95   : > { %v235_v15 = vpop.xlane.xlu0 %234 }
  0x96   : > { %237 = vst.msk [vmem:[%s468_s1] sm:$0xf] %vm236_vm1, %v235_v15 }
  0x9d   : > { %v241_v16 = vpop.xlane.xlu0 %240 }
  0x9e   : > { %242 = vst.msk [vmem:[%s469_s2] sm:$0xf] %vm236_vm1, %v241_v16 }
  0x9f PF: > { %s13_s11 = sadd.s32 1, %s407_s11   ;;  %s470_s9 = smov %s403_s10 }
  0xa0   : > { %p10_p7 = scmp.ge.s32.totalorder %s13_s11, 4   ;;  %s471_s10 = smov %s473_s12 }
  0xa2   :  { %12 = sbr.rel (!%p10_p7) target bundleno = 2 (0x2), region = 74 }

</bundles_post_ra>
